<compile_context>
chip_gen: v7x
topology: tpu7x:2x2x1
jax: 0.10.0
libtpu: 0.0.40
codegen_flags: <defaults>
</compile_context>

<pallas_src>
import jax
import jax.numpy as jnp
from jax.experimental import pallas as pl
from jax.experimental.pallas import tpu as pltpu


def conv_bn_act_kernel(p_ref, w_ref, s_ref, b_ref, o_ref):
    # p_ref: (N, K, HW)    bf16 im2col patches, K = Cin*KH*KW, HW lane-dense
    # w_ref: (Cout, K)     bf16 conv weights (unscaled; BN scale applied in f32)
    # s_ref: (Cout, 1)     f32 BN scale  = gamma / sqrt(var + eps)
    # b_ref: (Cout, 1)     f32 fused bias = beta + (conv_bias - mean) * scale
    # o_ref: (N, Cout, HW) f32 output, lane-dense (HW is a multiple of 128)
    n_batch = o_ref.shape[0]
    w = w_ref[...]
    scale = s_ref[...]
    bias = b_ref[...]
    # Static (trace-time unrolled) loop over the tiny batch: one
    # weight-stationary MXU matmul per element; the (Cout, HW) accumulator is
    # already in the output layout, so the epilogue is 2 full f32 vregs.
    for n in range(n_batch):
        acc = jnp.dot(w, p_ref[n], preferred_element_type=jnp.float32)
        y = jnp.clip(acc * scale + bias, 0.0, 6.0)
        o_ref[n] = y.astype(o_ref.dtype)


def conv2d_block(x_nchw, w_oihw, conv_bias, gamma, beta,
                 running_mean, running_var, eps=1e-5):
    N, Cin, H, W = x_nchw.shape
    Cout, _, KH, KW = w_oihw.shape
    pad = 1  # Conv2d(kernel_size=3, stride=1, padding=1)
    K = Cin * KH * KW
    HW = H * W

    # --- wrapper glue (fuses under jit; no NHWC/NCHW transposes needed) -----
    # im2col directly in (N, K, HW) layout, K ordered (cin, kh, kw) so the
    # OIHW weight flattens with a plain reshape.
    x_pad = jnp.pad(x_nchw, ((0, 0), (0, 0), (pad, pad), (pad, pad)))
    taps = [x_pad[:, :, kh:kh + H, kw:kw + W].reshape(N, Cin, HW)
            for kh in range(KH) for kw in range(KW)]
    patches = jnp.stack(taps, axis=2).reshape(N, K, HW).astype(jnp.bfloat16)

    w_flat = w_oihw.reshape(Cout, K).astype(jnp.bfloat16)

    # Eval-mode BN folded into per-channel f32 scale/bias (applied in-kernel).
    inv_std = 1.0 / jnp.sqrt(running_var + eps)
    scale = (gamma * inv_std).astype(jnp.float32)
    bias = (beta + (conv_bias - running_mean) * scale).astype(jnp.float32)
    scale_c1 = scale.reshape(Cout, 1)
    bias_c1 = bias.reshape(Cout, 1)

    # --- fused conv + BN + ReLU6 kernel: single invocation, all in VMEM -----
    out = pl.pallas_call(
        conv_bn_act_kernel,
        out_shape=jax.ShapeDtypeStruct((N, Cout, HW), x_nchw.dtype),
        in_specs=[
            pl.BlockSpec(memory_space=pltpu.MemorySpace.VMEM),
            pl.BlockSpec(memory_space=pltpu.MemorySpace.VMEM),
            pl.BlockSpec(memory_space=pltpu.MemorySpace.VMEM),
            pl.BlockSpec(memory_space=pltpu.MemorySpace.VMEM),
        ],
        out_specs=pl.BlockSpec(memory_space=pltpu.MemorySpace.VMEM),
    )(patches, w_flat, scale_c1, bias_c1)

    # (N, Cout, HW) -> (N, Cout, H, W): free reshape, no transpose.
    return out.reshape(N, Cout, H, W)


def reference(x_nchw, w_oihw, conv_bias, gamma, beta,
              running_mean, running_var, eps=1e-5):
    y = jax.lax.conv_general_dilated(
        x_nchw, w_oihw, window_strides=(1, 1),
        padding=((1, 1), (1, 1)),
        dimension_numbers=('NCHW', 'OIHW', 'NCHW'))
    y = y + conv_bias[None, :, None, None]
    y = (y - running_mean[None, :, None, None]) \
        * (gamma / jnp.sqrt(running_var + eps))[None, :, None, None] \
        + beta[None, :, None, None]
    return jnp.clip(y, 0.0, 6.0)


if __name__ == "__main__":
    key = jax.random.PRNGKey(0)
    k_x, k_w, k_b, k_g, k_be, k_m, k_v = jax.random.split(key, 7)

    N, Cin, H, W = 2, 4, 16, 16
    Cout, KH, KW = 8, 3, 3

    x = jax.random.normal(k_x, (N, Cin, H, W), dtype=jnp.float32)
    conv_w = jax.random.normal(k_w, (Cout, Cin, KH, KW), dtype=jnp.float32) * 0.1
    conv_b = jax.random.normal(k_b, (Cout,), dtype=jnp.float32) * 0.1
    gamma = 1.0 + 0.1 * jax.random.normal(k_g, (Cout,), dtype=jnp.float32)
    beta = 0.1 * jax.random.normal(k_be, (Cout,), dtype=jnp.float32)
    running_mean = 0.1 * jax.random.normal(k_m, (Cout,), dtype=jnp.float32)
    running_var = jnp.abs(1.0 + 0.1 * jax.random.normal(k_v, (Cout,),
                                                        dtype=jnp.float32))

    fn = jax.jit(conv2d_block)  # fuses the small wrapper glue around the call
    out = fn(x, conv_w, conv_b, gamma, beta, running_mean, running_var)
    out = jax.block_until_ready(out)

    ref = reference(x, conv_w, conv_b, gamma, beta, running_mean, running_var)
    assert out.shape == (N, Cout, H, W), out.shape
    # Tolerance accounts for the bf16 MXU operands (f32 accumulation/epilogue).
    assert jnp.allclose(out, ref, rtol=2e-2, atol=2e-2), \
        float(jnp.max(jnp.abs(out - ref)))

    print("KERNEL_OK")
</pallas_src>

<mosaic_0001>
module attributes {stable_mosaic.version = 11 : i64} {
  func.func @conv_bn_act_kernel(%arg0: memref<2x36x256xbf16, #tpu.memory_space<vmem>>, %arg1: memref<8x36xbf16, #tpu.memory_space<vmem>>, %arg2: memref<8x1xf32, #tpu.memory_space<vmem>>, %arg3: memref<8x1xf32, #tpu.memory_space<vmem>>, %arg4: memref<2x8x256xf32, #tpu.memory_space<vmem>>) attributes {dimension_semantics = [], scalar_prefetch = 0 : i64, scratch_operands = 0 : i64, tpu.core_type = #tpu.core_type<tc>} {
    %c0 = arith.constant 0 : index
    %c0_0 = arith.constant 0 : index
    %0 = vector.load %arg1[%c0, %c0_0] : memref<8x36xbf16, #tpu.memory_space<vmem>>, vector<8x36xbf16>
    %c0_1 = arith.constant 0 : index
    %c0_2 = arith.constant 0 : index
    %1 = vector.load %arg2[%c0_1, %c0_2] : memref<8x1xf32, #tpu.memory_space<vmem>>, vector<8x1xf32>
    %c0_3 = arith.constant 0 : index
    %c0_4 = arith.constant 0 : index
    %2 = vector.load %arg3[%c0_3, %c0_4] : memref<8x1xf32, #tpu.memory_space<vmem>>, vector<8x1xf32>
    %c0_5 = arith.constant 0 : index
    %c0_6 = arith.constant 0 : index
    %c0_7 = arith.constant 0 : index
    %3 = vector.load %arg0[%c0_5, %c0_6, %c0_7] : memref<2x36x256xbf16, #tpu.memory_space<vmem>>, vector<1x36x256xbf16>
    %4 = vector.shape_cast %3 : vector<1x36x256xbf16> to vector<36x256xbf16>
    %cst = arith.constant dense<0.000000e+00> : vector<8x256xf32>
    %5 = tpu.matmul %0, %4, %cst {dimension_numbers = #tpu.dot_dimension_numbers<[1], [0], [0], [1], [0, 0, 1, 1], [], []>} : vector<8x36xbf16>, vector<36x256xbf16>, vector<8x256xf32> -> vector<8x256xf32>
    %6 = vector.broadcast %1 : vector<8x1xf32> to vector<8x256xf32>
    %7 = arith.mulf %5, %6 : vector<8x256xf32>
    %8 = vector.broadcast %2 : vector<8x1xf32> to vector<8x256xf32>
    %9 = arith.addf %7, %8 : vector<8x256xf32>
    %cst_8 = arith.constant 0.000000e+00 : f32
    %cst_9 = arith.constant 6.000000e+00 : f32
    %10 = vector.broadcast %cst_8 : f32 to vector<8x256xf32>
    %11 = arith.maximumf %10, %9 : vector<8x256xf32>
    %12 = vector.broadcast %cst_9 : f32 to vector<8x256xf32>
    %13 = arith.minimumf %12, %11 : vector<8x256xf32>
    %c0_10 = arith.constant 0 : index
    %c0_11 = arith.constant 0 : index
    %c0_12 = arith.constant 0 : index
    %14 = vector.load %arg4[%c0_10, %c0_11, %c0_12] : memref<2x8x256xf32, #tpu.memory_space<vmem>>, vector<1x8x256xf32>
    %15 = vector.shape_cast %14 : vector<1x8x256xf32> to vector<8x256xf32>
    %16 = vector.shape_cast %13 : vector<8x256xf32> to vector<1x8x256xf32>
    tpu.vector_store %arg4[%c0_10, %c0_11, %c0_12], %16 {strides = array<i32>} : memref<2x8x256xf32, #tpu.memory_space<vmem>>, vector<1x8x256xf32>,
    %c1 = arith.constant 1 : index
    %c0_13 = arith.constant 0 : index
    %c0_14 = arith.constant 0 : index
    %17 = vector.load %arg0[%c1, %c0_13, %c0_14] : memref<2x36x256xbf16, #tpu.memory_space<vmem>>, vector<1x36x256xbf16>
    %18 = vector.shape_cast %17 : vector<1x36x256xbf16> to vector<36x256xbf16>
    %cst_15 = arith.constant dense<0.000000e+00> : vector<8x256xf32>
    %19 = tpu.matmul %0, %18, %cst_15 {dimension_numbers = #tpu.dot_dimension_numbers<[1], [0], [0], [1], [0, 0, 1, 1], [], []>} : vector<8x36xbf16>, vector<36x256xbf16>, vector<8x256xf32> -> vector<8x256xf32>
    %20 = vector.broadcast %1 : vector<8x1xf32> to vector<8x256xf32>
    %21 = arith.mulf %19, %20 : vector<8x256xf32>
    %22 = vector.broadcast %2 : vector<8x1xf32> to vector<8x256xf32>
    %23 = arith.addf %21, %22 : vector<8x256xf32>
    %cst_16 = arith.constant 0.000000e+00 : f32
    %cst_17 = arith.constant 6.000000e+00 : f32
    %24 = vector.broadcast %cst_16 : f32 to vector<8x256xf32>
    %25 = arith.maximumf %24, %23 : vector<8x256xf32>
    %26 = vector.broadcast %cst_17 : f32 to vector<8x256xf32>
    %27 = arith.minimumf %26, %25 : vector<8x256xf32>
    %c1_18 = arith.constant 1 : index
    %c0_19 = arith.constant 0 : index
    %c0_20 = arith.constant 0 : index
    %28 = vector.load %arg4[%c1_18, %c0_19, %c0_20] : memref<2x8x256xf32, #tpu.memory_space<vmem>>, vector<1x8x256xf32>
    %29 = vector.shape_cast %28 : vector<1x8x256xf32> to vector<8x256xf32>
    %30 = vector.shape_cast %27 : vector<8x256xf32> to vector<1x8x256xf32>
    tpu.vector_store %arg4[%c1_18, %c0_19, %c0_20], %30 {strides = array<i32>} : memref<2x8x256xf32, #tpu.memory_space<vmem>>, vector<1x8x256xf32>,
    return
  }
}

</mosaic_0001>

<bundles_post_ra>
// kernel: conv2d_block.1
= control target key start
LH: loop header
LB: loop body
LE: loop exit
PB: predicated region body
PF: predicated region fallthrough
CT: control target
= control target key end

     0   :  { %v257_v1 = vmov 0   ;;  %vm55_vm0 = vcmask 1041408   ;;  %vm51_vm1 = vcmask 293888   ;;  %s338_s0 = inlined_call_operand.vmem [shape: bf16[2,36,256], index: 0, kind: input, shape index: {}]   ;;  %s339_s2 = inlined_call_operand.vmem [shape: f32[8,1], index: 2, kind: input, shape index: {}]   ;;  %s340_s3 = inlined_call_operand.vmem [shape: f32[8,1], index: 3, kind: input, shape index: {}]   ;;  %s341_s1 = inlined_call_operand.vmem [shape: bf16[8,36], index: 1, kind: input, shape index: {}]   ;;  %s342_s4 = inlined_call_operand.vmem [shape: f32[2,8,256], index: 4, kind: output, shape index: {}]  }
   0x1   :  { %v241_v0 = vld [vmem:[%s338_s0 + $0x4] ss:$8 sps:$4 sm:$0xff]   ;;  %94 = vmatprep.mubr.bf16.mxu0 %v257_v1  ;;  %192 = vmatprep.mubr.bf16.mxu1 %v257_v1  ;;  %v245_v3 = vld [vmem:[%s338_s0] ss:$8 sps:$4 sm:$0xff]   ;;  %v247_v5 = vld [vmem:[%s338_s0 + $0x14] ss:$8 sps:$4 sm:$0xff]  }
   0x2   :  { %v243_v2 = vld [vmem:[%s338_s0 + $0x2c] ss:$8 sps:$4 sm:$0xff]   ;;  %240 = vset.pattern.permute.xlu0 %v257_v1  ;;  %62 = vmatprep.subr.bf16.mxu0 %v241_v0  ;;  %v246_v4 = vld [vmem:[%s338_s0 + $0x28] ss:$8 sps:$4 sm:$0xff]   ;;  %v249_v6 = vld [vmem:[%s338_s0 + $0x3c] ss:$8 sps:$4 sm:$0xff]  }
   0x3   :  { %160 = vmatprep.subr.bf16.mxu1 %v243_v2  ;;  %63 = vmatpush1.bf16.msra.mxu0 %v245_v3  ;;  %v251_v7 = vld [vmem:[%s338_s0 + $0x10] ss:$8 sps:$4 sm:$0xff]   ;;  %v25_v9 = vld [vmem:[%s338_s0 + $0x20] sm:$0x33]  ;;  %v228_v10 = vld [vmem:[%s338_s0 + $0x48] sm:$0x33] }
   0x4   :  { %161 = vmatpush1.bf16.msra.mxu1 %v246_v4  ;;  %64 = vmatprep.subr.bf16.mxu0 %v247_v5  ;;  %v252_v8 = vld [vmem:[%s338_s0 + $0x38] ss:$8 sps:$4 sm:$0xff]   ;;  %v221_v11 = vcombine.high %v25_v9, %v25_v9  ;;  %v234_v12 = vcombine.high %v228_v10, %v228_v10  ;;  %v220_v13 = vcombine.low %v25_v9, %v25_v9 }
   0x5   :  { %162 = vmatprep.subr.bf16.mxu1 %v249_v6  ;;  %v233_v14 = vcombine.low %v228_v10, %v228_v10  ;;  %v19_v15 = vld [vmem:[%s339_s2] sm:$0xff] }
   0x6   :  { %105 = vperm.xlu0 %240, %v19_v15   ;;  %v20_v16 = vld [vmem:[%s340_s3] sm:$0xff]  ;;  %v57_v17 = vsel %vm55_vm0, %v220_v13, 0 }
   0x7   :  { %65 = vmatpush1.bf16.msra.mxu0 %v251_v7  ;;  %v155_v18 = vsel %vm55_vm0, %v233_v14, 0  ;;  %v18_v19 = vld [vmem:[%s341_s1] sm:$0xf] }
   0x8   :  { %163 = vmatpush1.bf16.msra.mxu1 %v252_v8  ;;  %222 = vmatprep.subr.msk.bf16.mxu0 %vm55_vm0, %v221_v11 }
   0x9   :  { %235 = vmatprep.subr.msk.bf16.mxu1 %vm55_vm0, %v234_v12 }
   0xa   :  { %112 = vperm.xlu0 %240, %v20_v16  }
   0xb   :  { %67 = vmatpush1.bf16.msra.mxu0 %v57_v17 }
   0xc   :  { %165 = vmatpush1.bf16.msra.mxu1 %v155_v18 }
   0xe   :  { %223 = vmatmul.mubr.msk.bf16.vlgmr.msra.gmra.mrb[0].mxu0 %vm51_vm1, %v18_v19 }
   0xf   :  { %236 = vmatmul.mubr.msk.bf16.vlgmr.msra.gmra.mrb[0].mxu1 %vm51_vm1, %v18_v19 }
  0x85   :  { %v106_v20 = vpop.permute.xlu0 %105 }
  0x89   :  { %v113_v21 = vpop.permute.xlu0 %112 }
  0xe1   :  { %v96_v22 = vpop.f32.mrb[0].mxu0 }
  0xe2   :  { %v194_v23 = vpop.f32.mrb[0].mxu1  ;;  %v108_v24 = vmul.f32 %v106_v20, %v96_v22  ;;  %v98_v26 = vpop.f32.mrb[1].mxu0 }
  0xe3   :  { %v201_v25 = vmul.f32 %v194_v23, %v106_v20  ;;  %v196_v27 = vpop.f32.mrb[1].mxu1  ;;  %v109_v28 = vmul.f32 %v106_v20, %v98_v26  ;;  %v100_v30 = vpop.f32.mrb[2].mxu0 }
  0xe4   :  { %v202_v29 = vmul.f32 %v196_v27, %v106_v20  ;;  %v198_v31 = vpop.f32.mrb[2].mxu1  ;;  %v115_v32 = vadd.f32 %v113_v21, %v108_v24  ;;  %v101_v34 = vpop.f32.mrb[3].mxu0 }
  0xe5   :  { %v203_v33 = vadd.f32 %v201_v25, %v113_v21  ;;  %v199_v35 = vpop.f32.mrb[3].mxu1  ;;  %v116_v36 = vadd.f32 %v113_v21, %v109_v28 }
  0xe6   :  { %v204_v37 = vadd.f32 %v202_v29, %v113_v21  ;;  %v117_v38 = vmax.f32 %v115_v32, 0.0 }
  0xe7   :  { %v205_v39 = vmax.f32 %v203_v33, 0.0  ;;  %v118_v40 = vmax.f32 %v116_v36, 0.0 }
  0xe8   :  { %v206_v41 = vmax.f32 %v204_v37, 0.0  ;;  %v119_v42 = vmin.f32 %v117_v38, 6.0 }
  0xe9   :  { %v207_v43 = vmin.f32 %v205_v39, 6.0  ;;  %v120_v44 = vmin.f32 %v118_v40, 6.0 }
  0xea   :  { %v208_v45 = vmin.f32 %v206_v41, 6.0  ;;  %121 = vst [vmem:[%s342_s4] sm:$0xff] %v119_v42 }
  0xeb   :  { %237 = vst [vmem:[%s342_s4 + $0x10] sm:$0xff] %v207_v43  ;;  %122 = vst [vmem:[%s342_s4 + $0x8] sm:$0xff] %v120_v44 }
  0xec   :  { %238 = vst [vmem:[%s342_s4 + $0x18] sm:$0xff] %v208_v45 }

</bundles_post_ra>
